<compile_context>
chip_gen: v6e
topology: v6e:2x2x1
jax: 0.10.0
libtpu: 0.0.40
codegen_flags: <defaults>
</compile_context>

<pallas_src>
import jax
import jax.numpy as jnp
from jax.experimental import pallas as pl
from jax.experimental.pallas import tpu as pltpu

_TILE_V_MAX = 2048  # vocab tile width (lanes); sweepable 1024-2048


def _round_up(x, m):
    return ((x + m - 1) // m) * m


def _pad_to(x, shape):
    pads = [(0, t - s) for s, t in zip(x.shape, shape)]
    return jnp.pad(x, pads)


def _const_spec(shape):
    """BlockSpec for a block that is identical at every grid step: single-buffer it."""
    idx = lambda j: (0, 0)
    try:
        return pl.BlockSpec(shape, idx, pipeline_mode=pl.Buffered(1))
    except TypeError:  # older pallas without pipeline_mode kwarg
        return pl.BlockSpec(shape, idx)


def decoder_kernel(x_ref, h_ref, wi_ref, wh_ref, b_rz_ref, b_in_ref, b_hn_ref,
                   wfc_ref, bfc_ref,
                   logp_ref, state_ref,
                   h_bf16_ref, m_ref, l_ref):
    """Grid axis 0 tiles the (padded) vocab. GRU runs once at step 0; each step computes a
    logits tile into the resident log-prob block and updates online-softmax stats; the last
    step normalizes in place with a single subtract."""
    j = pl.program_id(0)
    nv = pl.num_programs(0)
    hp = h_ref.shape[1]          # padded hidden size (multiple of 128)
    tile_v = wfc_ref.shape[1]    # vocab tile width (multiple of 128)

    @pl.when(j == 0)
    def _gru():
        x = x_ref[...].astype(jnp.bfloat16)                   # (Bp, E)
        h = h_ref[...]                                        # (Bp, Hp) f32
        # Two fused matmuls instead of six (N = 3*Hp lanes each), f32 accumulation.
        gi = jnp.dot(x, wi_ref[...], preferred_element_type=jnp.float32)                       # (Bp, 3Hp)
        gh = jnp.dot(h.astype(jnp.bfloat16), wh_ref[...], preferred_element_type=jnp.float32)  # (Bp, 3Hp)
        # r / z gates: input+hidden biases were pre-summed into b_rz.
        rz = jax.nn.sigmoid(gi[:, :2 * hp] + gh[:, :2 * hp] + b_rz_ref[...])
        r = rz[:, :hp]
        z = rz[:, hp:]
        # n gate: b_hn cannot be folded (it is scaled by r), matching nn.GRU semantics.
        n = jnp.tanh(gi[:, 2 * hp:] + b_in_ref[...] + r * (gh[:, 2 * hp:] + b_hn_ref[...]))
        h_new = (1.0 - z) * n + z * h                         # (Bp, Hp) f32
        state_ref[...] = h_new                                # new hidden state output (resident)
        h_bf16_ref[...] = h_new.astype(jnp.bfloat16)          # cached once for all FC tiles
        # Online-softmax running stats.
        m_ref[...] = jnp.full_like(m_ref, -jnp.inf)
        l_ref[...] = jnp.zeros_like(l_ref)

    # FC projection for this vocab tile; store raw logits into the resident output block.
    logits = jnp.dot(h_bf16_ref[...], wfc_ref[...],
                     preferred_element_type=jnp.float32) + bfc_ref[...]   # (Bp, TILE_V)
    off = pl.multiple_of(j * tile_v, tile_v)
    logp_ref[:, pl.ds(off, tile_v)] = logits

    # Online softmax statistics (VPU/EUP/XLU work hidden under the next w_fc tile DMA).
    tile_m = jnp.max(logits, axis=1, keepdims=True)           # (Bp, 1)
    m_prev = m_ref[...]
    m_new = jnp.maximum(m_prev, tile_m)
    corr = jnp.exp(m_prev - m_new)                            # exp(-inf)=0 on the first tile
    l_ref[...] = l_ref[...] * corr + jnp.sum(jnp.exp(logits - m_new), axis=1, keepdims=True)
    m_ref[...] = m_new

    @pl.when(j == nv - 1)
    def _finalize():
        lse = m_ref[...] + jnp.log(l_ref[...])                # (Bp, 1)
        logp_ref[...] = logp_ref[...] - lse                   # single in-place normalize


def make_decoder_params(key, vocab_size, embedding_dim, dec_units):
    """Raw f32 parameters in the PyTorch module's layout (per-gate, pre-transposed)."""
    ks = jax.random.split(key, 16)
    s = 0.05

    def rnd(k, shape, scale=s):
        return jax.random.normal(k, shape, jnp.float32) * scale

    return {
        "embedding": rnd(ks[0], (vocab_size, embedding_dim)),
        "w_ir": rnd(ks[1], (embedding_dim, dec_units)),
        "w_iz": rnd(ks[2], (embedding_dim, dec_units)),
        "w_in": rnd(ks[3], (embedding_dim, dec_units)),
        "w_hr": rnd(ks[4], (dec_units, dec_units)),
        "w_hz": rnd(ks[5], (dec_units, dec_units)),
        "w_hn": rnd(ks[6], (dec_units, dec_units)),
        "b_ir": rnd(ks[7], (1, dec_units)),
        "b_iz": rnd(ks[8], (1, dec_units)),
        "b_in": rnd(ks[9], (1, dec_units)),
        "b_hr": rnd(ks[10], (1, dec_units)),
        "b_hz": rnd(ks[11], (1, dec_units)),
        "b_hn": rnd(ks[12], (1, dec_units)),
        "w_fc": rnd(ks[13], (dec_units, vocab_size)),
        "b_fc": rnd(ks[14], (1, vocab_size), 0.01),
    }


def pack_decoder_params(raw):
    """One-time packing: fuse gates, pad to lane multiples, fold r/z biases, cast to bf16."""
    E, H = raw["w_ir"].shape
    V = raw["w_fc"].shape[1]
    Hp = _round_up(H, 128)
    tile_v = min(_TILE_V_MAX, _round_up(V, 128))
    Vp = _round_up(V, tile_v)

    wi = jnp.concatenate([_pad_to(raw[k], (E, Hp)) for k in ("w_ir", "w_iz", "w_in")], axis=1)   # (E, 3Hp)
    wh = jnp.concatenate([_pad_to(raw[k], (Hp, Hp)) for k in ("w_hr", "w_hz", "w_hn")], axis=1)  # (Hp, 3Hp)
    b_rz = jnp.concatenate([_pad_to(raw["b_ir"] + raw["b_hr"], (1, Hp)),
                            _pad_to(raw["b_iz"] + raw["b_hz"], (1, Hp))], axis=1)                # (1, 2Hp)
    b_in = _pad_to(raw["b_in"], (1, Hp))
    b_hn = _pad_to(raw["b_hn"], (1, Hp))
    wfc = _pad_to(raw["w_fc"], (Hp, Vp))
    # Padded vocab columns get a very negative bias so they never win the running max / sum-exp.
    bfc = jnp.pad(raw["b_fc"], ((0, 0), (0, Vp - V)), constant_values=-1e30)

    return {
        "embedding": raw["embedding"],
        "wi": wi.astype(jnp.bfloat16),
        "wh": wh.astype(jnp.bfloat16),
        "b_rz": b_rz,
        "b_in": b_in,
        "b_hn": b_hn,
        "wfc": wfc.astype(jnp.bfloat16),   # TODO(synk): int8 (v5e/v6e) / fp8 (v7x) weight-only quant
        "bfc": bfc,
    }


def decoder_forward(packed, inputs, hidden):
    """
    inputs: (B, 1) int32 token ids
    hidden: (1, B, H) float32
    returns (log_probs (B, V), new_state (1, B, H)) — same as the PyTorch module.
    """
    B = inputs.shape[0]
    H = hidden.shape[2]
    V, E = packed["embedding"].shape
    Hp = packed["wh"].shape[0]
    Vp = packed["wfc"].shape[1]
    tile_v = min(_TILE_V_MAX, Vp)       # consistent with pack_decoder_params by construction
    n_v = Vp // tile_v
    Bp = _round_up(B, 8)                # sublane-pad the batch

    # Glue: embedding gather + squeeze seq/layer dims, pad to kernel shapes.
    # TODO(synk): fuse this gather into the kernel via scalar-prefetch token ids + row DMA.
    x_emb = jnp.take(packed["embedding"], inputs[:, 0], axis=0)     # (B, E)
    x_p = _pad_to(x_emb, (Bp, E))
    h_p = _pad_to(hidden[0], (Bp, Hp))

    const = lambda j: (0, 0)
    in_specs = [
        _const_spec((Bp, E)),                           # x            (single-buffered)
        _const_spec((Bp, Hp)),                          # h            (single-buffered)
        _const_spec((E, 3 * Hp)),                       # W_i_all      (single-buffered)
        _const_spec((Hp, 3 * Hp)),                      # W_h_all      (single-buffered)
        _const_spec((1, 2 * Hp)),                       # b_rz folded  (single-buffered)
        _const_spec((1, Hp)),                           # b_in         (single-buffered)
        _const_spec((1, Hp)),                           # b_hn         (single-buffered)
        pl.BlockSpec((Hp, tile_v), lambda j: (0, j)),   # w_fc tile (pipelined over vocab)
        pl.BlockSpec((1, tile_v), lambda j: (0, j)),    # b_fc tile
    ]
    out_specs = (
        pl.BlockSpec((Bp, Vp), const),                  # log-probs: resident across vocab grid
        pl.BlockSpec((Bp, Hp), const),                  # new hidden state
    )
    out_shape = (
        jax.ShapeDtypeStruct((Bp, Vp), jnp.float32),
        jax.ShapeDtypeStruct((Bp, Hp), jnp.float32),
    )
    args = (x_p, h_p, packed["wi"], packed["wh"], packed["b_rz"],
            packed["b_in"], packed["b_hn"], packed["wfc"], packed["bfc"])

    # Explicit VMEM budget sized from the actual block footprint (+50% headroom), clamped so it
    # stays within v7x's 64 MiB physical VMEM; floor of 32 MiB so small configs never regress.
    bytes_const = (Bp * E * 4 + Bp * Hp * 4                      # x, h (f32)
                   + E * 3 * Hp * 2 + Hp * 3 * Hp * 2            # wi, wh (bf16, single-buffered)
                   + (2 * Hp + Hp + Hp) * 4)                     # biases (f32)
    bytes_stream = 2 * (Hp * tile_v * 2 + tile_v * 4)            # wfc + bfc tiles, double-buffered
    bytes_out = Bp * Vp * 4 + Bp * Hp * 4                        # resident logp + state
    bytes_scratch = Bp * Hp * 2 + 2 * Bp * 4                     # h_bf16 + (m, l)
    footprint = bytes_const + bytes_stream + bytes_out + bytes_scratch
    vmem_limit = int(min(max(int(footprint * 1.5), 32 * 1024 * 1024), 60 * 1024 * 1024))

    flops = 2 * Bp * (E * 3 * Hp + Hp * 3 * Hp + Hp * Vp)
    transcendentals = Bp * (3 * Hp + 2 * Vp)
    bytes_accessed = sum(int(a.size) * a.dtype.itemsize for a in args) + Bp * Vp * 4 + Bp * Hp * 4

    log_probs_p, state_p = pl.pallas_call(
        decoder_kernel,
        grid=(n_v,),
        in_specs=in_specs,
        out_specs=out_specs,
        out_shape=out_shape,
        scratch_shapes=[
            pltpu.VMEM((Bp, Hp), jnp.bfloat16),   # h_new cached in bf16 for every FC tile
            pltpu.VMEM((Bp, 1), jnp.float32),     # running max (online softmax)
            pltpu.VMEM((Bp, 1), jnp.float32),     # running sum-exp (online softmax)
        ],
        input_output_aliases={1: 1},              # in-place hidden-state update
        compiler_params=pltpu.CompilerParams(
            dimension_semantics=("arbitrary",),
            vmem_limit_bytes=vmem_limit),
        cost_estimate=pl.CostEstimate(flops=flops, transcendentals=transcendentals,
                                      bytes_accessed=bytes_accessed),
    )(*args)

    return log_probs_p[:B, :V], state_p[:B, :H][None, :, :]


def decoder_forward_ref(raw, inputs, hidden):
    """Pure-JAX f32 reference (PyTorch nn.GRU + Linear + LogSoftmax semantics)."""
    x = jnp.take(raw["embedding"], inputs[:, 0], axis=0)
    h = hidden[0]
    gi_r = x @ raw["w_ir"] + raw["b_ir"]
    gi_z = x @ raw["w_iz"] + raw["b_iz"]
    gi_n = x @ raw["w_in"] + raw["b_in"]
    gh_r = h @ raw["w_hr"] + raw["b_hr"]
    gh_z = h @ raw["w_hz"] + raw["b_hz"]
    gh_n = h @ raw["w_hn"] + raw["b_hn"]
    r = jax.nn.sigmoid(gi_r + gh_r)
    z = jax.nn.sigmoid(gi_z + gh_z)
    n = jnp.tanh(gi_n + r * gh_n)
    h_new = (1.0 - z) * n + z * h
    logits = h_new @ raw["w_fc"] + raw["b_fc"]
    return jax.nn.log_softmax(logits, axis=1), h_new[None]


if __name__ == "__main__":
    batch_size = 2
    vocab_size = 128
    embedding_dim = 256
    dec_units = 64

    key = jax.random.PRNGKey(0)
    k_params, k_tok, k_hid = jax.random.split(key, 3)

    raw = make_decoder_params(k_params, vocab_size, embedding_dim, dec_units)
    packed = pack_decoder_params(raw)

    inputs = jax.random.randint(k_tok, (batch_size, 1), 0, vocab_size, dtype=jnp.int32)  # (B, 1)
    hidden = jax.random.normal(k_hid, (1, batch_size, dec_units), jnp.float32)           # (1, B, H)

    log_probs, state = jax.jit(decoder_forward)(packed, inputs, hidden)
    jax.block_until_ready((log_probs, state))

    ref_logp, ref_state = decoder_forward_ref(raw, inputs, hidden)
    assert log_probs.shape == (batch_size, vocab_size)
    assert state.shape == (1, batch_size, dec_units)
    # log-softmax rows should sum to ~1 in prob space
    assert jnp.allclose(jnp.sum(jnp.exp(log_probs), axis=1), 1.0, atol=1e-4)
    # bf16 weights vs f32 reference -> modest tolerance
    assert jnp.allclose(log_probs, ref_logp, atol=2e-2, rtol=2e-2)
    assert jnp.allclose(state, ref_state, atol=2e-2, rtol=2e-2)

    print("KERNEL_OK")
</pallas_src>

<mosaic_0001>
module attributes {stable_mosaic.version = 11 : i64} {
  func.func @decoder_kernel(%arg0: i32, %arg1: memref<8x256xf32, #tpu.memory_space<vmem>>, %arg2: memref<8x128xf32, #tpu.memory_space<vmem>>, %arg3: memref<256x384xbf16, #tpu.memory_space<vmem>>, %arg4: memref<128x384xbf16, #tpu.memory_space<vmem>>, %arg5: memref<1x256xf32, #tpu.memory_space<vmem>>, %arg6: memref<1x128xf32, #tpu.memory_space<vmem>>, %arg7: memref<1x128xf32, #tpu.memory_space<vmem>>, %arg8: memref<128x128xbf16, #tpu.memory_space<vmem>>, %arg9: memref<1x128xf32, #tpu.memory_space<vmem>>, %arg10: memref<8x128xf32, #tpu.memory_space<vmem>>, %arg11: memref<8x128xf32, #tpu.memory_space<vmem>>, %arg12: memref<8x128xbf16, #tpu.memory_space<vmem>>, %arg13: memref<8x1xf32, #tpu.memory_space<vmem>>, %arg14: memref<8x1xf32, #tpu.memory_space<vmem>>) attributes {dimension_semantics = [#tpu.dimension_semantics<arbitrary>], iteration_bounds = array<i64: 1>, scalar_prefetch = 0 : i64, scratch_operands = 3 : i64, tpu.core_type = #tpu.core_type<tc>, window_params = [{pipeline_mode = #tpu.pipeline_mode<synchronous>, transform_indices = @transform_0, window_bounds = array<i64: 8, 256>}, {pipeline_mode = #tpu.pipeline_mode<synchronous>, transform_indices = @transform_1, window_bounds = array<i64: 8, 128>}, {pipeline_mode = #tpu.pipeline_mode<synchronous>, transform_indices = @transform_2, window_bounds = array<i64: 256, 384>}, {pipeline_mode = #tpu.pipeline_mode<synchronous>, transform_indices = @transform_3, window_bounds = array<i64: 128, 384>}, {pipeline_mode = #tpu.pipeline_mode<synchronous>, transform_indices = @transform_4, window_bounds = array<i64: 1, 256>}, {pipeline_mode = #tpu.pipeline_mode<synchronous>, transform_indices = @transform_5, window_bounds = array<i64: 1, 128>}, {pipeline_mode = #tpu.pipeline_mode<synchronous>, transform_indices = @transform_6, window_bounds = array<i64: 1, 128>}, {transform_indices = @transform_7, window_bounds = array<i64: 128, 128>}, {transform_indices = @transform_8, window_bounds = array<i64: 1, 128>}, {pipeline_mode = #tpu.pipeline_mode<synchronous>, transform_indices = @transform_9, window_bounds = array<i64: 8, 128>}, {pipeline_mode = #tpu.pipeline_mode<synchronous>, transform_indices = @transform_10, window_bounds = array<i64: 8, 128>}]} {
    %c0_i32 = arith.constant 0 : i32
    %0 = arith.cmpi eq, %arg0, %c0_i32 : i32
    %1 = arith.extui %0 : i1 to i32
    %c0_i32_0 = arith.constant 0 : i32
    %2 = arith.cmpi ne, %1, %c0_i32_0 : i32
    scf.if %2 {
      %c0_19 = arith.constant 0 : index
      %c0_20 = arith.constant 0 : index
      %32 = vector.load %arg1[%c0_19, %c0_20] : memref<8x256xf32, #tpu.memory_space<vmem>>, vector<8x256xf32>
      %33 = arith.truncf %32 : vector<8x256xf32> to vector<8x256xbf16>
      %c0_21 = arith.constant 0 : index
      %c0_22 = arith.constant 0 : index
      %34 = vector.load %arg2[%c0_21, %c0_22] : memref<8x128xf32, #tpu.memory_space<vmem>>, vector<8x128xf32>
      %c0_23 = arith.constant 0 : index
      %c0_24 = arith.constant 0 : index
      %35 = vector.load %arg3[%c0_23, %c0_24] : memref<256x384xbf16, #tpu.memory_space<vmem>>, vector<256x384xbf16>
      %cst_25 = arith.constant dense<0.000000e+00> : vector<8x384xf32>
      %36 = tpu.matmul %33, %35, %cst_25 {dimension_numbers = #tpu.dot_dimension_numbers<[1], [0], [0], [1], [0, 0, 1, 1], [], []>} : vector<8x256xbf16>, vector<256x384xbf16>, vector<8x384xf32> -> vector<8x384xf32>
      %37 = arith.truncf %34 : vector<8x128xf32> to vector<8x128xbf16>
      %c0_26 = arith.constant 0 : index
      %c0_27 = arith.constant 0 : index
      %38 = vector.load %arg4[%c0_26, %c0_27] : memref<128x384xbf16, #tpu.memory_space<vmem>>, vector<128x384xbf16>
      %cst_28 = arith.constant dense<0.000000e+00> : vector<8x384xf32>
      %39 = tpu.matmul %37, %38, %cst_28 {dimension_numbers = #tpu.dot_dimension_numbers<[1], [0], [0], [1], [0, 0, 1, 1], [], []>} : vector<8x128xbf16>, vector<128x384xbf16>, vector<8x384xf32> -> vector<8x384xf32>
      %40 = vector.extract_strided_slice %36 {offsets = [0, 0], sizes = [8, 256], strides = [1, 1]} : vector<8x384xf32> to vector<8x256xf32>
      %41 = vector.extract_strided_slice %39 {offsets = [0, 0], sizes = [8, 256], strides = [1, 1]} : vector<8x384xf32> to vector<8x256xf32>
      %42 = arith.addf %40, %41 : vector<8x256xf32>
      %c0_29 = arith.constant 0 : index
      %c0_30 = arith.constant 0 : index
      %43 = vector.load %arg5[%c0_29, %c0_30] : memref<1x256xf32, #tpu.memory_space<vmem>>, vector<1x256xf32>
      %44 = vector.broadcast %43 : vector<1x256xf32> to vector<8x256xf32>
      %45 = arith.addf %42, %44 : vector<8x256xf32>
      %46 = arith.negf %45 : vector<8x256xf32>
      %47 = math.exp %46 : vector<8x256xf32>
      %cst_31 = arith.constant 1.000000e+00 : f32
      %48 = vector.broadcast %cst_31 : f32 to vector<8x256xf32>
      %49 = arith.addf %48, %47 : vector<8x256xf32>
      %50 = arith.divf %48, %49 : vector<8x256xf32>
      %51 = vector.extract_strided_slice %50 {offsets = [0, 0], sizes = [8, 128], strides = [1, 1]} : vector<8x256xf32> to vector<8x128xf32>
      %52 = vector.extract_strided_slice %50 {offsets = [0, 128], sizes = [8, 128], strides = [1, 1]} : vector<8x256xf32> to vector<8x128xf32>
      %53 = vector.extract_strided_slice %36 {offsets = [0, 256], sizes = [8, 128], strides = [1, 1]} : vector<8x384xf32> to vector<8x128xf32>
      %c0_32 = arith.constant 0 : index
      %c0_33 = arith.constant 0 : index
      %54 = vector.load %arg6[%c0_32, %c0_33] : memref<1x128xf32, #tpu.memory_space<vmem>>, vector<1x128xf32>
      %55 = vector.broadcast %54 : vector<1x128xf32> to vector<8x128xf32>
      %56 = arith.addf %53, %55 : vector<8x128xf32>
      %57 = vector.extract_strided_slice %39 {offsets = [0, 256], sizes = [8, 128], strides = [1, 1]} : vector<8x384xf32> to vector<8x128xf32>
      %c0_34 = arith.constant 0 : index
      %c0_35 = arith.constant 0 : index
      %58 = vector.load %arg7[%c0_34, %c0_35] : memref<1x128xf32, #tpu.memory_space<vmem>>, vector<1x128xf32>
      %59 = vector.broadcast %58 : vector<1x128xf32> to vector<8x128xf32>
      %60 = arith.addf %57, %59 : vector<8x128xf32>
      %61 = arith.mulf %51, %60 : vector<8x128xf32>
      %62 = arith.addf %56, %61 : vector<8x128xf32>
      %63 = math.tanh %62 : vector<8x128xf32>
      %cst_36 = arith.constant 1.000000e+00 : f32
      %64 = vector.broadcast %cst_36 : f32 to vector<8x128xf32>
      %65 = arith.subf %64, %52 : vector<8x128xf32>
      %66 = arith.mulf %65, %63 : vector<8x128xf32>
      %67 = arith.mulf %52, %34 : vector<8x128xf32>
      %68 = arith.addf %66, %67 : vector<8x128xf32>
      %c0_37 = arith.constant 0 : index
      %c0_38 = arith.constant 0 : index
      %69 = vector.load %arg11[%c0_37, %c0_38] : memref<8x128xf32, #tpu.memory_space<vmem>>, vector<8x128xf32>
      tpu.vector_store %arg11[%c0_37, %c0_38], %68 {strides = array<i32>} : memref<8x128xf32, #tpu.memory_space<vmem>>, vector<8x128xf32>,
      %70 = arith.truncf %68 : vector<8x128xf32> to vector<8x128xbf16>
      %c0_39 = arith.constant 0 : index
      %c0_40 = arith.constant 0 : index
      %71 = vector.load %arg12[%c0_39, %c0_40] : memref<8x128xbf16, #tpu.memory_space<vmem>>, vector<8x128xbf16>
      tpu.vector_store %arg12[%c0_39, %c0_40], %70 {strides = array<i32>} : memref<8x128xbf16, #tpu.memory_space<vmem>>, vector<8x128xbf16>,
      %cst_41 = arith.constant 0xFF800000 : f32
      %72 = vector.broadcast %cst_41 : f32 to vector<8x1xf32>
      %c0_42 = arith.constant 0 : index
      %c0_43 = arith.constant 0 : index
      %73 = vector.load %arg13[%c0_42, %c0_43] : memref<8x1xf32, #tpu.memory_space<vmem>>, vector<8x1xf32>
      tpu.vector_store %arg13[%c0_42, %c0_43], %72 {strides = array<i32>} : memref<8x1xf32, #tpu.memory_space<vmem>>, vector<8x1xf32>,
      %cst_44 = arith.constant 0.000000e+00 : f32
      %74 = vector.broadcast %cst_44 : f32 to vector<8x1xf32>
      %c0_45 = arith.constant 0 : index
      %c0_46 = arith.constant 0 : index
      %75 = vector.load %arg14[%c0_45, %c0_46] : memref<8x1xf32, #tpu.memory_space<vmem>>, vector<8x1xf32>
      tpu.vector_store %arg14[%c0_45, %c0_46], %74 {strides = array<i32>} : memref<8x1xf32, #tpu.memory_space<vmem>>, vector<8x1xf32>,
    } else {
    }
    %c0 = arith.constant 0 : index
    %c0_1 = arith.constant 0 : index
    %3 = vector.load %arg12[%c0, %c0_1] : memref<8x128xbf16, #tpu.memory_space<vmem>>, vector<8x128xbf16>
    %c0_2 = arith.constant 0 : index
    %c0_3 = arith.constant 0 : index
    %4 = vector.load %arg8[%c0_2, %c0_3] : memref<128x128xbf16, #tpu.memory_space<vmem>>, vector<128x128xbf16>
    %cst = arith.constant dense<0.000000e+00> : vector<8x128xf32>
    %5 = tpu.matmul %3, %4, %cst {dimension_numbers = #tpu.dot_dimension_numbers<[1], [0], [0], [1], [0, 0, 1, 1], [], []>} : vector<8x128xbf16>, vector<128x128xbf16>, vector<8x128xf32> -> vector<8x128xf32>
    %c0_4 = arith.constant 0 : index
    %c0_5 = arith.constant 0 : index
    %6 = vector.load %arg9[%c0_4, %c0_5] : memref<1x128xf32, #tpu.memory_space<vmem>>, vector<1x128xf32>
    %7 = vector.broadcast %6 : vector<1x128xf32> to vector<8x128xf32>
    %8 = arith.addf %5, %7 : vector<8x128xf32>
    %c128_i32 = arith.constant 128 : i32
    %9 = arith.muli %arg0, %c128_i32 : i32
    %10 = tpu.assume_multiple %9, 128 : i32
    %c0_6 = arith.constant 0 : index
    %11 = arith.index_cast %10 : i32 to index
    %12 = vector.load %arg10[%c0_6, %11] : memref<8x128xf32, #tpu.memory_space<vmem>>, vector<8x128xf32>
    tpu.vector_store %arg10[%c0_6, %11], %8 {strides = array<i32>} : memref<8x128xf32, #tpu.memory_space<vmem>>, vector<8x128xf32>,
    %cst_7 = arith.constant dense<0xFF800000> : vector<8xf32>
    %13 = vector.multi_reduction <maximumf>, %8, %cst_7 [1] : vector<8x128xf32> to vector<8xf32>
    %14 = vector.shape_cast %13 : vector<8xf32> to vector<8x1xf32>
    %c0_8 = arith.constant 0 : index
    %c0_9 = arith.constant 0 : index
    %15 = vector.load %arg13[%c0_8, %c0_9] : memref<8x1xf32, #tpu.memory_space<vmem>>, vector<8x1xf32>
    %16 = arith.maximumf %15, %14 : vector<8x1xf32>
    %17 = arith.subf %15, %16 : vector<8x1xf32>
    %18 = math.exp %17 : vector<8x1xf32>
    %c0_10 = arith.constant 0 : index
    %c0_11 = arith.constant 0 : index
    %19 = vector.load %arg14[%c0_10, %c0_11] : memref<8x1xf32, #tpu.memory_space<vmem>>, vector<8x1xf32>
    %20 = arith.mulf %19, %18 : vector<8x1xf32>
    %21 = vector.broadcast %16 : vector<8x1xf32> to vector<8x128xf32>
    %22 = arith.subf %8, %21 : vector<8x128xf32>
    %23 = math.exp %22 : vector<8x128xf32>
    %cst_12 = arith.constant dense<0.000000e+00> : vector<8xf32>
    %24 = vector.multi_reduction <add>, %23, %cst_12 [1] : vector<8x128xf32> to vector<8xf32>
    %25 = vector.shape_cast %24 : vector<8xf32> to vector<8x1xf32>
    %26 = arith.addf %20, %25 : vector<8x1xf32>
    %c0_13 = arith.constant 0 : index
    %c0_14 = arith.constant 0 : index
    %27 = vector.load %arg14[%c0_13, %c0_14] : memref<8x1xf32, #tpu.memory_space<vmem>>, vector<8x1xf32>
    tpu.vector_store %arg14[%c0_13, %c0_14], %26 {strides = array<i32>} : memref<8x1xf32, #tpu.memory_space<vmem>>, vector<8x1xf32>,
    %c0_15 = arith.constant 0 : index
    %c0_16 = arith.constant 0 : index
    %28 = vector.load %arg13[%c0_15, %c0_16] : memref<8x1xf32, #tpu.memory_space<vmem>>, vector<8x1xf32>
    tpu.vector_store %arg13[%c0_15, %c0_16], %16 {strides = array<i32>} : memref<8x1xf32, #tpu.memory_space<vmem>>, vector<8x1xf32>,
    %c0_i32_17 = arith.constant 0 : i32
    %29 = arith.cmpi eq, %arg0, %c0_i32_17 : i32
    %30 = arith.extui %29 : i1 to i32
    %c0_i32_18 = arith.constant 0 : i32
    %31 = arith.cmpi ne, %30, %c0_i32_18 : i32
    scf.if %31 {
      %c0_19 = arith.constant 0 : index
      %c0_20 = arith.constant 0 : index
      %32 = vector.load %arg13[%c0_19, %c0_20] : memref<8x1xf32, #tpu.memory_space<vmem>>, vector<8x1xf32>
      %c0_21 = arith.constant 0 : index
      %c0_22 = arith.constant 0 : index
      %33 = vector.load %arg14[%c0_21, %c0_22] : memref<8x1xf32, #tpu.memory_space<vmem>>, vector<8x1xf32>
      %34 = math.log %33 : vector<8x1xf32>
      %35 = arith.addf %32, %34 : vector<8x1xf32>
      %c0_23 = arith.constant 0 : index
      %c0_24 = arith.constant 0 : index
      %36 = vector.load %arg10[%c0_23, %c0_24] : memref<8x128xf32, #tpu.memory_space<vmem>>, vector<8x128xf32>
      %37 = vector.broadcast %35 : vector<8x1xf32> to vector<8x128xf32>
      %38 = arith.subf %36, %37 : vector<8x128xf32>
      %c0_25 = arith.constant 0 : index
      %c0_26 = arith.constant 0 : index
      %39 = vector.load %arg10[%c0_25, %c0_26] : memref<8x128xf32, #tpu.memory_space<vmem>>, vector<8x128xf32>
      tpu.vector_store %arg10[%c0_25, %c0_26], %38 {strides = array<i32>} : memref<8x128xf32, #tpu.memory_space<vmem>>, vector<8x128xf32>,
    } else {
    }
    return
  }
  func.func @transform_0(%arg0: i32) -> (i32, i32) {
    %c0_i32 = arith.constant 0 : i32
    %c0_i32_0 = arith.constant 0 : i32
    %c0_i32_1 = arith.constant 0 : i32
    return %c0_i32, %c0_i32_0 : i32, i32
  }
  func.func @transform_1(%arg0: i32) -> (i32, i32) {
    %c0_i32 = arith.constant 0 : i32
    %c0_i32_0 = arith.constant 0 : i32
    %c0_i32_1 = arith.constant 0 : i32
    return %c0_i32, %c0_i32_0 : i32, i32
  }
  func.func @transform_2(%arg0: i32) -> (i32, i32) {
    %c0_i32 = arith.constant 0 : i32
    %c0_i32_0 = arith.constant 0 : i32
    %c0_i32_1 = arith.constant 0 : i32
    return %c0_i32, %c0_i32_0 : i32, i32
  }
  func.func @transform_3(%arg0: i32) -> (i32, i32) {
    %c0_i32 = arith.constant 0 : i32
    %c0_i32_0 = arith.constant 0 : i32
    %c0_i32_1 = arith.constant 0 : i32
    return %c0_i32, %c0_i32_0 : i32, i32
  }
  func.func @transform_4(%arg0: i32) -> (i32, i32) {
    %c0_i32 = arith.constant 0 : i32
    %c0_i32_0 = arith.constant 0 : i32
    %c0_i32_1 = arith.constant 0 : i32
    return %c0_i32, %c0_i32_0 : i32, i32
  }
  func.func @transform_5(%arg0: i32) -> (i32, i32) {
    %c0_i32 = arith.constant 0 : i32
    %c0_i32_0 = arith.constant 0 : i32
    %c0_i32_1 = arith.constant 0 : i32
    return %c0_i32, %c0_i32_0 : i32, i32
  }
  func.func @transform_6(%arg0: i32) -> (i32, i32) {
    %c0_i32 = arith.constant 0 : i32
    %c0_i32_0 = arith.constant 0 : i32
    %c0_i32_1 = arith.constant 0 : i32
    return %c0_i32, %c0_i32_0 : i32, i32
  }
  func.func @transform_7(%arg0: i32) -> (i32, i32) {
    %c0_i32 = arith.constant 0 : i32
    %c0_i32_0 = arith.constant 0 : i32
    return %c0_i32, %arg0 : i32, i32
  }
  func.func @transform_8(%arg0: i32) -> (i32, i32) {
    %c0_i32 = arith.constant 0 : i32
    %c0_i32_0 = arith.constant 0 : i32
    return %c0_i32, %arg0 : i32, i32
  }
  func.func @transform_9(%arg0: i32) -> (i32, i32) {
    %c0_i32 = arith.constant 0 : i32
    %c0_i32_0 = arith.constant 0 : i32
    %c0_i32_1 = arith.constant 0 : i32
    return %c0_i32, %c0_i32_0 : i32, i32
  }
  func.func @transform_10(%arg0: i32) -> (i32, i32) {
    %c0_i32 = arith.constant 0 : i32
    %c0_i32_0 = arith.constant 0 : i32
    %c0_i32_1 = arith.constant 0 : i32
    return %c0_i32, %c0_i32_0 : i32, i32
  }
}

</mosaic_0001>

<bundles_post_ra>
// kernel: decoder_forward.1
= control target key start
LH: loop header
LB: loop body
LE: loop exit
PB: predicated region body
PF: predicated region fallthrough
CT: control target
= control target key end

     0   :  { %16 = vsyncpa [#allocation6], 0  ;;  %s1433_s0 = inlined_call_operand.vmem [shape: f32[8,256], index: 0, kind: input, shape index: {}]   ;;  %s1434_s1 = inlined_call_operand.vmem [shape: f32[8,128], index: 1, kind: input, shape index: {}, may-alias: {1,10}]   ;;  %s1435_s2 = inlined_call_operand.hbm [shape: bf16[256,384], index: 2, kind: input, shape index: {}]   ;;  %s1436_s3 = inlined_call_operand.hbm [shape: bf16[128,384], index: 3, kind: input, shape index: {}]   ;;  %s1437_s4 = inlined_call_operand.vmem [shape: f32[1,256], index: 4, kind: input, shape index: {}]   ;;  %s1438_s5 = inlined_call_operand.vmem [shape: f32[1,128], index: 5, kind: input, shape index: {}]   ;;  %s1439_s6 = inlined_call_operand.vmem [shape: f32[1,128], index: 6, kind: input, shape index: {}]   ;;  %s1440_s7 = inlined_call_operand.vmem [shape: bf16[128,128], index: 7, kind: input, shape index: {}]   ;;  %s1441_s8 = inlined_call_operand.vmem [shape: f32[1,128], index: 8, kind: input, shape index: {}]   ;;  %s1442_s9 = inlined_call_operand.vmem [shape: f32[8,128], index: 9, kind: output, shape index: {0}]   ;;  %s1443_s10 = inlined_call_operand.vmem [shape: f32[8,128], index: 10, kind: output, shape index: {1}, may-alias: {1,10}]  }
   0x1   :  { %17 = vsyncpa [#allocation8], 0  ;;  %s1278_s13 = smov [#allocation5]  }
   0x2   :  { %s27_s14 = sshll.u32 %s1278_s13, 4  ;;  %s28_s14 = int_to_ptr.vmem [resolvable:$true] %s27_s14 }
   0x3   :  { %s1242_s15 = scalar_lea.vmem %s28_s14, 6144  ;;  %p1247_p1 = scmp.lt.s32.totalorder %s28_s14, %s28_s14 }
   0x4   :  { %p1243_p0 = scmp.ne.s32.totalorder %s28_s14, %s1242_s15  ;;  %p1248_p2 = scmp.lt.s32.totalorder %s1242_s15, %s1242_s15 }
   0x6   :  { %p1249_p3 = por %p1248_p2, %p1247_p1 }
   0x8   :  { %p1250_p4 = pnand %p1249_p3, %p1243_p0 }
   0xa   :  { %1253 = shalt.err (!%p1250_p4)
}
   0xb   :  { %s1279_s16 = smov 192   ;;  %s1280_s17 = smov 12  }
   0xc   :  { %33 = dma.hbm_to_vmem [thread:$0]  %s1435_s2, 6144, %s28_s14, [#allocation6], %s1279_s16, %s1279_s16, %s1280_s17  }
   0xd   :  { %s1281_s20 = smov [#allocation7]  }
   0xe   :  { %s39_s21 = sshll.u32 %s1281_s20, 4  ;;  %s40_s21 = int_to_ptr.vmem [resolvable:$true] %s39_s21 }
   0xf   :  { %s1262_s22 = scalar_lea.vmem %s40_s21, 3072  ;;  %p1267_p6 = scmp.lt.s32.totalorder %s40_s21, %s40_s21 }
  0x10   :  { %p1263_p5 = scmp.ne.s32.totalorder %s40_s21, %s1262_s22  ;;  %p1268_p7 = scmp.lt.s32.totalorder %s1262_s22, %s1262_s22 }
  0x12   :  { %p1269_p8 = por %p1268_p7, %p1267_p6 }
  0x14   :  { %p1270_p9 = pnand %p1269_p8, %p1263_p5 }
  0x16   :  { %1273 = shalt.err (!%p1270_p9)
}
  0x17   :  { %45 = dma.hbm_to_vmem [thread:$0]  %s1436_s3, 3072, %s40_s21, [#allocation8], %s1279_s16, %s1279_s16, %s1280_s17  }
  0x18   :  { %1274 = dma.done.wait [#allocation6], 6144  }
  0x19   :  { %1275 = vsyncadd [#allocation6], 4294961152 }
  0x1a   :  { %1276 = dma.done.wait [#allocation8], 3072  }
  0x1b   :  { %1277 = vsyncadd [#allocation8], 4294964224  ;;  %v1282_v0 = vmov 0   ;;  %v1114_v1 = vld [vmem:[#allocation5 + $0xac] ss:$12 sps:$4 sm:$0xff]   ;;  %vm1284_vm0 = vmmov 0  }
  0x1c   :  { %1112 = vset.pattern.permute.xlu0 %v1282_v0  ;;  %1113 = vset.pattern.permute.xlu1 %v1282_v0  ;;  %v1116_v2 = vld [vmem:[#allocation5 + $0x170] ss:$12 sps:$4 sm:$0xff]   ;;  %v1117_v3 = vld [vmem:[#allocation5 + $0xa8] ss:$12 sps:$4 sm:$0xff]   ;;  %v1121_v6 = vld [vmem:[#allocation5 + $0x158] ss:$12 sps:$4 sm:$0xff]  }
  0x1d   :  { %392 = vmatprep.subr.bf16.mxu0 %v1114_v1  ;;  %1024 = vmatprep.subr.bf16.mxu1 %v1116_v2  ;;  %v1118_v4 = vld [vmem:[#allocation5 + $0xb0] ss:$12 sps:$4 sm:$0xff]   ;;  %v1119_v5 = vld [vmem:[#allocation5 + $0x94] ss:$12 sps:$4 sm:$0xff]   ;;  %v1123_v8 = vld [vmem:[#allocation5 + $0x98] ss:$12 sps:$4 sm:$0xff]  }
  0x1e   :  { %393 = vmatpush1.bf16.msra.mxu0 %v1117_v3  ;;  %1025 = vmatpush3.bf16.msra.mxu1 %v1118_v4  ;;  %v1122_v7 = vld [vmem:[#allocation5 + $0x90] ss:$12 sps:$4 sm:$0xff]   ;;  %v1126_v10 = vld [vmem:[#allocation5 + $0x140] ss:$12 sps:$4 sm:$0xff]   ;;  %v1127_v11 = vld [vmem:[#allocation5 + $0x78] ss:$12 sps:$4 sm:$0xff]  }
  0x1f   :  { %394 = vmatprep.subr.bf16.mxu0 %v1119_v5  ;;  %1026 = vmatprep.subr.bf16.mxu1 %v1121_v6  ;;  %v1124_v9 = vld [vmem:[#allocation5 + $0x7c] ss:$12 sps:$4 sm:$0xff]   ;;  %v1128_v12 = vld [vmem:[#allocation5 + $0x80] ss:$12 sps:$4 sm:$0xff]   ;;  %v1129_v13 = vld [vmem:[#allocation5 + $0x64] ss:$12 sps:$4 sm:$0xff]  }
  0x20   :  { %v1131_v14 = vld [vmem:[#allocation5 + $0x128] ss:$12 sps:$4 sm:$0xff]   ;;  %v1132_v15 = vld [vmem:[#allocation5 + $0x60] ss:$12 sps:$4 sm:$0xff]   ;;  %v1136_v18 = vld [vmem:[#allocation5 + $0x110] ss:$12 sps:$4 sm:$0xff]  }
  0x21   :  { %v1133_v16 = vld [vmem:[#allocation5 + $0x68] ss:$12 sps:$4 sm:$0xff]   ;;  %v1134_v17 = vld [vmem:[#allocation5 + $0x4c] ss:$12 sps:$4 sm:$0xff]   ;;  %v1138_v20 = vld [vmem:[#allocation5 + $0x50] ss:$12 sps:$4 sm:$0xff]  }
  0x22   :  { %395 = vmatpush1.bf16.msra.mxu0 %v1122_v7  ;;  %1027 = vmatpush3.bf16.msra.mxu1 %v1123_v8  ;;  %v1137_v19 = vld [vmem:[#allocation5 + $0x48] ss:$12 sps:$4 sm:$0xff]   ;;  %v1141_v22 = vld [vmem:[#allocation5 + $0xf8] ss:$12 sps:$4 sm:$0xff]   ;;  %v1142_v23 = vld [vmem:[#allocation5 + $0x30] ss:$12 sps:$4 sm:$0xff]  }
  0x23   :  { %396 = vmatprep.subr.bf16.mxu0 %v1124_v9  ;;  %1028 = vmatprep.subr.bf16.mxu1 %v1126_v10  ;;  %v1139_v21 = vld [vmem:[#allocation5 + $0x34] ss:$12 sps:$4 sm:$0xff]   ;;  %v1143_v24 = vld [vmem:[#allocation5 + $0x38] ss:$12 sps:$4 sm:$0xff]   ;;  %v1144_v25 = vld [vmem:[#allocation5 + $0x1c] ss:$12 sps:$4 sm:$0xff]  }
  0x24   :  { %v1146_v26 = vld [vmem:[#allocation5 + $0xe0] ss:$12 sps:$4 sm:$0xff]   ;;  %v1147_v27 = vld [vmem:[#allocation5 + $0x18] ss:$12 sps:$4 sm:$0xff]   ;;  %v1151_v30 = vld [vmem:[#allocation5 + $0xc8] ss:$12 sps:$4 sm:$0xff]  }
  0x25   :  { %v1148_v28 = vld [vmem:[#allocation5 + $0x20] ss:$12 sps:$4 sm:$0xff]   ;;  %v1149_v29 = vld [vmem:[#allocation5 + $0x4] ss:$12 sps:$4 sm:$0xff]   ;;  %v68_v31 = vld [vmem:[%s1433_s0 + $0x8] sm:$0xff]  ;;  %v1283_v8 = vmov 0.0  }
  0x26   :  { %397 = vmatpush1.bf16.msra.mxu0 %v1127_v11  ;;  %1029 = vmatpush3.bf16.msra.mxu1 %v1128_v12  ;;  %v70_v32 = vpack.c.bf16 %v68_v31, %v68_v31  ;;  %v1152_v33 = vld [vmem:[#allocation5] ss:$12 sps:$4 sm:$0xff]   ;;  %v1153_v34 = vld [vmem:[#allocation5 + $0x8] ss:$12 sps:$4 sm:$0xff]   ;;  %v1165_v43 = vld [vmem:[#allocation5 + $0x150] ss:$12 sps:$4 sm:$0xff]  }
  0x27   :  { %398 = vmatprep.subr.bf16.mxu0 %v1129_v13  ;;  %1030 = vmatprep.subr.bf16.mxu1 %v1131_v14  ;;  %v1154_v35 = vld [vmem:[#allocation5 + $0x16c] ss:$12 sps:$4 sm:$0xff]   ;;  %v1156_v39 = vld [vmem:[#allocation7 + $0xa8] ss:$12 sps:$4 sm:$0xff]   ;;  %v1162_v44 = vld [vmem:[#allocation7 + $0x90] ss:$12 sps:$4 sm:$0xff]  }
  0x28   :  { %v67_v36 = vld [vmem:[%s1433_s0] sm:$0xff]  ;;  %465 = vmatprep.mubr.bf16.mxu1 %v70_v32  ;;  %424 = vmatprep.mubr.bf16.mxu0 %v70_v32  ;;  %v1159_v40 = vld [vmem:[#allocation5 + $0x168] ss:$12 sps:$4 sm:$0xff]   ;;  %v1168_v47 = vld [vmem:[#allocation7 + $0x78] ss:$12 sps:$4 sm:$0xff]   ;;  %vm769_vm1 = vcmask 7168  }
  0x29   :  { %v1158_v37 = vld [vmem:[#allocation7 + $0xac] ss:$12 sps:$4 sm:$0xff]   ;;  %v1355_v38 = vpack.c.bf16 %v67_v36, %v67_v36  ;;  %v1160_v41 = vld [vmem:[#allocation5 + $0x154] ss:$12 sps:$4 sm:$0xff]   ;;  %v1166_v45 = vld [vmem:[#allocation5 + $0x13c] ss:$12 sps:$4 sm:$0xff]  }
  0x2a   :  { %399 = vmatpush1.bf16.msra.mxu0 %v1132_v15  ;;  %1031 = vmatpush3.bf16.msra.mxu1 %v1133_v16  ;;  %v1164_v42 = vld [vmem:[#allocation7 + $0x94] ss:$12 sps:$4 sm:$0xff]   ;;  %v1170_v46 = vld [vmem:[#allocation7 + $0x7c] ss:$12 sps:$4 sm:$0xff]   ;;  %v1171_v48 = vld [vmem:[#allocation5 + $0x138] ss:$12 sps:$4 sm:$0xff]  }
  0x2b   :  { %400 = vmatprep.subr.bf16.mxu0 %v1134_v17  ;;  %1032 = vmatprep.subr.bf16.mxu1 %v1136_v18  ;;  %v1172_v49 = vld [vmem:[#allocation5 + $0x124] ss:$12 sps:$4 sm:$0xff]   ;;  %v1177_v51 = vld [vmem:[#allocation5 + $0x120] ss:$12 sps:$4 sm:$0xff]   ;;  %v1180_v55 = vld [vmem:[#allocation7 + $0x48] ss:$12 sps:$4 sm:$0xff]  }
  0x2c   :  { %v1176_v50 = vld [vmem:[#allocation7 + $0x64] ss:$12 sps:$4 sm:$0xff]   ;;  %v1174_v52 = vld [vmem:[#allocation7 + $0x60] ss:$12 sps:$4 sm:$0xff]   ;;  %v1183_v56 = vld [vmem:[#allocation5 + $0x108] ss:$12 sps:$4 sm:$0xff]  }
  0x2d   :  { %v1178_v53 = vld [vmem:[#allocation5 + $0x10c] ss:$12 sps:$4 sm:$0xff]   ;;  %v1184_v57 = vld [vmem:[#allocation5 + $0xf4] ss:$12 sps:$4 sm:$0xff]   ;;  %v1186_v59 = vld [vmem:[#allocation7 + $0x30] ss:$12 sps:$4 sm:$0xff]  }
  0x2e   :  { %401 = vmatpush1.bf16.msra.mxu0 %v1137_v19  ;;  %1033 = vmatpush3.bf16.msra.mxu1 %v1138_v20  ;;  %v1182_v54 = vld [vmem:[#allocation7 + $0x4c] ss:$12 sps:$4 sm:$0xff]   ;;  %v1188_v58 = vld [vmem:[#allocation7 + $0x34] ss:$12 sps:$4 sm:$0xff]   ;;  %v1189_v60 = vld [vmem:[#allocation5 + $0xf0] ss:$12 sps:$4 sm:$0xff]  }
  0x2f   :  { %402 = vmatprep.subr.bf16.mxu0 %v1139_v21  ;;  %1034 = vmatprep.subr.bf16.mxu1 %v1141_v22  ;;  %v1190_v61 = vld [vmem:[#allocation5 + $0xdc] ss:$12 sps:$4 sm:$0xff]   ;;  %v1195_v63 = vld [vmem:[#allocation5 + $0xd8] ss:$12 sps:$4 sm:$0xff]   ;;  %v1201_v3 = vld [vmem:[#allocation5 + $0xc0] ss:$12 sps:$4 sm:$0xff]  }
  0x30   :  { %v1194_v62 = vld [vmem:[#allocation7 + $0x1c] ss:$12 sps:$4 sm:$0xff]   ;;  %v1196_v1 = vld [vmem:[#allocation5 + $0xc4] ss:$12 sps:$4 sm:$0xff]   ;;  %v1198_v4 = vld [vmem:[#allocation7] ss:$12 sps:$4 sm:$0xff]  }
  0x31   :  { %v1200_v2 = vld [vmem:[#allocation7 + $0x4] ss:$12 sps:$4 sm:$0xff]   ;;  %v1204_v10 = vld [vmem:[#allocation7 + $0x80] ss:$12 sps:$4 sm:$0xff]   ;;  %v1205_v11 = vld [vmem:[#allocation7 + $0x68] ss:$12 sps:$4 sm:$0xff]  }
  0x32   :  { %403 = vmatpush1.bf16.msra.mxu0 %v1142_v23  ;;  %1035 = vmatpush3.bf16.msra.mxu1 %v1143_v24  ;;  %v1362_v5 = vld [vmem:[%s1434_s1] sm:$0xff]  ;;  %v1203_v9 = vld [vmem:[#allocation7 + $0x98] ss:$12 sps:$4 sm:$0xff]   ;;  %v1209_v15 = vld [vmem:[#allocation7 + $0x8] ss:$12 sps:$4 sm:$0xff]   ;;  %771 = vst.msk [vmem:[#allocation4] sm:$0xff] %vm769_vm1, %v1283_v8 }
  0x33   :  { %404 = vmatprep.subr.bf16.mxu0 %v1144_v25  ;;  %1036 = vmatprep.subr.bf16.mxu1 %v1146_v26  ;;  %v473_v6 = vpack.c.bf16 %v1362_v5, %v1362_v5  ;;  %v1202_v7 = vld [vmem:[#allocation7 + $0xb0] ss:$12 sps:$4 sm:$0xff]   ;;  %v1207_v13 = vld [vmem:[#allocation7 + $0x38] ss:$12 sps:$4 sm:$0xff]   ;;  %v1208_v14 = vld [vmem:[#allocation7 + $0x20] ss:$12 sps:$4 sm:$0xff]  }
  0x34   :  { %v1206_v12 = vld [vmem:[#allocation7 + $0x50] ss:$12 sps:$4 sm:$0xff]   ;;  %v1210_v16 = vld [vmem:[%s1440_s7 + $0x38] sm:$0xff]   ;;  %v1212_v18 = vld [vmem:[%s1440_s7 + $0x28] sm:$0xff]  }
  0x35   :  { %v1211_v17 = vld [vmem:[%s1440_s7 + $0x30] sm:$0xff]   ;;  %v1213_v19 = vld [vmem:[%s1440_s7 + $0x20] sm:$0xff]   ;;  %v1214_v20 = vld [vmem:[%s1440_s7 + $0x18] sm:$0xff]  }
  0x36   :  { %405 = vmatpush1.bf16.msra.mxu0 %v1147_v27  ;;  %1037 = vmatpush3.bf16.msra.mxu1 %v1148_v28  ;;  %v1215_v21 = vld [vmem:[%s1440_s7 + $0x10] sm:$0xff]   ;;  %v1216_v22 = vld [vmem:[%s1440_s7 + $0x8] sm:$0xff]   ;;  %v1217_v23 = vld [vmem:[%s1440_s7] sm:$0xff]  }
  0x37   :  { %406 = vmatprep.subr.bf16.mxu0 %v1149_v29  ;;  %1038 = vmatprep.subr.bf16.mxu1 %v1151_v30  ;;  %v719_v29 = vlaneseq  ;;  %v717_v32 = vld [vmem:[%s1437_s4] sm:$0x3] }
  0x39   :  { %v720_v30 = vshrl.u32 %v719_v29, 7 }
  0x3a   :  { %407 = vmatpush1.bf16.msra.mxu0 %v1152_v33  ;;  %1039 = vmatpush3.bf16.msra.mxu1 %v1153_v34 }
  0x3b   :  { %408 = vmatprep.subr.bf16.mxu0 %v1154_v35  ;;  %634 = vmatprep.subr.bf16.mxu1 %v1158_v37  ;;  %v721_v31 = vsub.s32 0, %v720_v30 }
  0x3d   :  { %466 = vmatmul.mubr.bf16.vlgmr.msra.gmra.mxu1 %v1355_v38  ;;  %v722_v34 = vrot.slane %v717_v32, %v721_v31 }
  0x3e   :  { %409 = vmatpush2.bf16.msra.mxu0 %v1159_v40  ;;  %635 = vmatpush1.bf16.msra.mxu1 %v1156_v39 }
  0x3f   :  { %410 = vmatprep.subr.bf16.mxu0 %v1160_v41  ;;  %636 = vmatprep.subr.bf16.mxu1 %v1164_v42 }
  0x40   :  { %666 = vmatprep.mubr.bf16.mxu1 %v1282_v0  ;;  %v1192_v0 = vld [vmem:[#allocation7 + $0x18] ss:$12 sps:$4 sm:$0xff]  }
  0x42   :  { %411 = vmatpush2.bf16.msra.mxu0 %v1165_v43  ;;  %637 = vmatpush1.bf16.msra.mxu1 %v1162_v44 }
  0x43   :  { %412 = vmatprep.subr.bf16.mxu0 %v1166_v45  ;;  %638 = vmatprep.subr.bf16.mxu1 %v1170_v46 }
  0x46   :  { %413 = vmatpush2.bf16.msra.mxu0 %v1171_v48  ;;  %639 = vmatpush1.bf16.msra.mxu1 %v1168_v47 }
  0x47   :  { %414 = vmatprep.subr.bf16.mxu0 %v1172_v49  ;;  %640 = vmatprep.subr.bf16.mxu1 %v1176_v50 }
  0x4a   :  { %415 = vmatpush2.bf16.msra.mxu0 %v1177_v51  ;;  %641 = vmatpush1.bf16.msra.mxu1 %v1174_v52 }
  0x4b   :  { %416 = vmatprep.subr.bf16.mxu0 %v1178_v53  ;;  %642 = vmatprep.subr.bf16.mxu1 %v1182_v54  ;;  %v1014_v53 = vld [vmem:[%s1439_s6] ss:$0 sm:$0xff] }
  0x4e   :  { %417 = vmatpush2.bf16.msra.mxu0 %v1183_v56  ;;  %643 = vmatpush1.bf16.msra.mxu1 %v1180_v55 }
  0x4f   :  { %418 = vmatprep.subr.bf16.mxu0 %v1184_v57  ;;  %644 = vmatprep.subr.bf16.mxu1 %v1188_v58  ;;  %v1013_v58 = vld [vmem:[%s1438_s5] ss:$0 sm:$0xff] }
  0x52   :  { %419 = vmatpush2.bf16.msra.mxu0 %v1189_v60  ;;  %645 = vmatpush1.bf16.msra.mxu1 %v1186_v59 }
  0x53   :  { %420 = vmatprep.subr.bf16.mxu0 %v1190_v61  ;;  %646 = vmatprep.subr.bf16.mxu1 %v1194_v62 }
  0x56   :  { %421 = vmatpush2.bf16.msra.mxu0 %v1195_v63  ;;  %647 = vmatpush1.bf16.msra.mxu1 %v1192_v0 }
  0x57   :  { %422 = vmatprep.subr.bf16.mxu0 %v1196_v1  ;;  %648 = vmatprep.subr.bf16.mxu1 %v1200_v2 }
  0x5a   :  { %423 = vmatpush2.bf16.msra.mxu0 %v1201_v3  ;;  %649 = vmatpush1.bf16.msra.mxu1 %v1198_v4 }
  0x5b   :  { %1064 = vmatprep.subr.bf16.mxu0 %v1283_v8  ;;  %1084 = vmatprep.subr.bf16.mxu1 %v1283_v8 }
  0x5d   :  { %425 = vmatmul.mubr.bf16.vlgmr.msra.gmra.mxu0 %v1355_v38  ;;  %667 = vmatmul.mubr.bf16.vlgmr.msra.gmra.mxu1 %v473_v6  ;;  %v725_v38 = vsub.s32 1, %v720_v30 }
  0x5e   :  { %1065 = vmatpush3.bf16.msra.mxu0 %v1202_v7  ;;  %1080 = vmatprep.mubr.msk.bf16.mxu0 %vm1284_vm0, %v1283_v8 }
  0x5f   :  { %1066 = vmatprep.subr.bf16.mxu0 %v1283_v8  ;;  %1100 = vmatprep.mubr.msk.bf16.mxu1 %vm1284_vm0, %v1283_v8  ;;  %v726_v45 = vrot.slane %v717_v32, %v725_v38 }
  0x60   :  { %1085 = vmatpush3.bf16.msra.mxu1 %v1210_v16 }
  0x61   :  { %1086 = vmatprep.subr.bf16.mxu1 %v1283_v8 }
  0x62   :  { %1067 = vmatpush3.bf16.msra.mxu0 %v1203_v9 }
  0x63   :  { %1068 = vmatprep.subr.bf16.mxu0 %v1283_v8 }
  0x64   :  { %1087 = vmatpush3.bf16.msra.mxu1 %v1211_v17 }
  0x65   :  { %1088 = vmatprep.subr.bf16.mxu1 %v1283_v8 }
  0x66   :  { %1069 = vmatpush3.bf16.msra.mxu0 %v1204_v10 }
  0x67   :  { %1070 = vmatprep.subr.bf16.mxu0 %v1283_v8 }
  0x68   :  { %1089 = vmatpush3.bf16.msra.mxu1 %v1212_v18 }
  0x69   :  { %1090 = vmatprep.subr.bf16.mxu1 %v1283_v8 }
  0x6a   :  { %1071 = vmatpush3.bf16.msra.mxu0 %v1205_v11  ;;  %v1285_v11 = vmov -inf  }
  0x6b   :  { %1072 = vmatprep.subr.bf16.mxu0 %v1283_v8  ;;  %770 = vst.msk [vmem:[#allocation3] sm:$0xff] %vm769_vm1, %v1285_v11 }
  0x6c   :  { %1091 = vmatpush3.bf16.msra.mxu1 %v1213_v19 }
  0x6d   :  { %1092 = vmatprep.subr.bf16.mxu1 %v1283_v8 }
  0x6e   :  { %1073 = vmatpush3.bf16.msra.mxu0 %v1206_v12 }
  0x6f   :  { %1074 = vmatprep.subr.bf16.mxu0 %v1283_v8 }
  0x70   :  { %1093 = vmatpush3.bf16.msra.mxu1 %v1214_v20 }
  0x71   :  { %1094 = vmatprep.subr.bf16.mxu1 %v1283_v8 }
  0x72   :  { %1075 = vmatpush3.bf16.msra.mxu0 %v1207_v13  ;;  %v891_v17 = vld [vmem:[#allocation3] sm:$0xff] }
  0x73   :  { %1076 = vmatprep.subr.bf16.mxu0 %v1283_v8 }
  0x74   :  { %1095 = vmatpush3.bf16.msra.mxu1 %v1215_v21 }
  0x75   :  { %1096 = vmatprep.subr.bf16.mxu1 %v1283_v8 }
  0x76   :  { %1077 = vmatpush3.bf16.msra.mxu0 %v1208_v14 }
  0x77   :  { %1078 = vmatprep.subr.bf16.mxu0 %v1283_v8 }
  0x78   :  { %1097 = vmatpush3.bf16.msra.mxu1 %v1216_v22 }
  0x79   :  { %1098 = vmatprep.subr.bf16.mxu1 %v1283_v8 }
  0x7a   :  { %1079 = vmatpush3.bf16.msra.mxu0 %v1209_v15 }
  0x7c   :  { %1099 = vmatpush3.bf16.msra.mxu1 %v1217_v23 }
  0x7d   :  { %1081 = vmatmul.mubr.bf16.vlgmr.msra.gmra.mxu0 %v473_v6 }
  0xfd   :  { %v1040_v24 = vpop.f32.mrf.mxu1 }
  0xff   :  { %v1041_v25 = vpop.f32.mrf.mxu1 }
 0x100   :  { %v1042_v26 = vadd.f32 %v1041_v25, %v1040_v24 }
 0x101   :  { %v1043_v27 = vpop.f32.mrf.mxu1 }
 0x102   :  { %v750_v61 = vadd.f32 %v1042_v26, %v1013_v58  ;;  %v896_v26 = vld [vmem:[#allocation4] sm:$0xff] }
 0x103   :  { %v1044_v28 = vpop.f32.mrf.mxu1 }
 0x11d   :  { %v426_v33 = vpop.f32.mrf.mxu0  ;;  %v668_v35 = vpop.f32.mrf.mxu1 }
 0x11e   :  { %v715_v36 = vadd.f32 %v668_v35, %v426_v33 }
 0x11f   :  { %v428_v37 = vpop.f32.mrf.mxu0  ;;  %v670_v39 = vpop.f32.mrf.mxu1 }
 0x120   :  { %v729_v40 = vadd.f32 %v722_v34, %v715_v36  ;;  %v716_v44 = vadd.f32 %v670_v39, %v428_v37 }
 0x121   :  { %v430_v41 = vpop.f32.mrf.mxu0  ;;  %v672_v42 = vpop.f32.mrf.mxu1 }
 0x122   :  { %v1011_v43 = vmul.f32 -1.442695, %v729_v40  ;;  %v730_v48 = vadd.f32 %v726_v45, %v716_v44 }
 0x123   :  { %v431_v46 = vpop.f32.mrf.mxu0  ;;  %v673_v47 = vpop.f32.mrf.mxu1 }
 0x124   :  { %1218 = vpow2.f32 %v1011_v43  ;;  %v1012_v49 = vmul.f32 -1.442695, %v730_v48 }
 0x126   :  { %1220 = vpow2.f32 %v1012_v49 }
 0x131   :  { %v1219_v50 = vpop.eup %1218 }
 0x132   :  { %v737_v51 = vadd.f32 1.0, %v1219_v50 }
 0x133   :  { %v1221_v52 = vpop.eup %1220 }
 0x134   :  { %1222 = vrcp.f32 %v737_v51  ;;  %v738_v55 = vadd.f32 1.0, %v1221_v52 }
 0x136   :  { %1224 = vrcp.f32 %v738_v55 }
 0x13d   :  { %v709_v54 = vpop.f32.mrf.mxu0 }
 0x13e   :  { %v758_v56 = vadd.f32 %v1014_v53, %v709_v54 }
 0x13f   :  { %v1082_v57 = vpop.f32.mrf.mxu0 }
 0x141   :  { %v712_v59 = vpop.f32.mrf.mxu0  ;;  %v1223_v60 = vpop.eup %1222 }
 0x142   :  { %v759_v62 = vmul.f32 %v1223_v60, %v758_v56 }
 0x143   :  { %v1083_v63 = vpop.f32.mrf.mxu0  ;;  %v1225_v1 = vpop.eup %1224 }
 0x144   :  { %v760_v0 = vadd.f32 %v759_v62, %v750_v61  ;;  %v762_v2 = vsub.f32 1.0, %v1225_v1  ;;  %v764_v4 = vmul.f32 %v1225_v1, %v1362_v5  ;;  %v1015_v5 = vld [vmem:[%s1441_s8] ss:$0 sm:$0xff] }
 0x146   :  { %1226 = vtanh.f32 %v760_v0 }
 0x153   :  { %v1227_v3 = vpop.eup %1226 }
 0x154   :  { %v763_v6 = vmul.f32 %v1227_v3, %v762_v2 }
 0x156   :  { %v765_v7 = vadd.f32 %v764_v4, %v763_v6 }
 0x158   :  { %766 = vst [vmem:[%s1443_s10] sm:$0xff] %v765_v7  ;;  %v767_v9 = vpack.c.bf16 %v765_v7, %v765_v7 }
 0x15a   :  { %768 = vst [vmem:[#allocation2] sm:$0xf] %v767_v9 }
 0x161   :  { %v772_v10 = vld [vmem:[#allocation2] sm:$0xf] }
 0x162   :  { %1101 = vmatmul.mubr.bf16.vlgmr.msra.gmra.mxu1 %v772_v10 }
 0x222   :  { %v878_v12 = vpop.f32.mrf.mxu1 }
 0x223   :  { %v879_v13 = vadd.f32 %v1015_v5, %v878_v12 }
 0x224   :  { %v1102_v14 = vpop.f32.mrf.mxu1 }
 0x225   :  { %889 = vmax.xlane.f32.xlu0 %v879_v13 }
 0x226   :  { %v881_v15 = vpop.f32.mrf.mxu1 }
 0x228   :  { %v1103_v16 = vpop.f32.mrf.mxu1 }
 0x2ae   :  { %v890_v18 = vpop.xlane.xlu0 %889 }
 0x2af   :  { %v892_v19 = vmax.f32 %v891_v17, %v890_v18 }
 0x2b1   :  { %v893_v20 = vsub.f32 %v891_v17, %v892_v19  ;;  %911 = vst.msk [vmem:[#allocation3] sm:$0xff] %vm769_vm1, %v892_v19  ;;  %900 = vperm.xlu0 %1112, %v892_v19  }
 0x2b3   :  { %v894_v24 = vmul.f32 1.442695, %v893_v20 }
 0x2b8   :  { %v915_v33 = vld [vmem:[#allocation3] sm:$0xff] }
 0x32c   :  { %v901_v21 = vpop.permute.xlu0 %900 }
 0x32d   :  { %v903_v22 = vsub.f32 %v879_v13, %v901_v21 }
 0x32f   :  { %v904_v8 = vmul.f32 1.442695, %v903_v22 }
 0x331   :  { %1228 = vpow2.f32 %v904_v8 }
 0x332   :  { %1230 = vpow2.f32 %v894_v24 }
 0x33e   :  { %v1229_v23 = vpop.eup %1228 }
 0x33f   :  { %906 = vadd.xlane.f32.xlu1 %v1229_v23  ;;  %v1231_v25 = vpop.eup %1230 }
 0x340   :  { %v897_v27 = vmul.f32 %v1231_v25, %v896_v26 }
 0x3c8   :  { %v907_v28 = vpop.xlane.xlu1 %906 }
 0x3c9   :  { %v908_v29 = vadd.f32 %v907_v28, %v897_v27 }
 0x3cb   :  { %910 = vst.msk [vmem:[#allocation4] sm:$0xff] %vm769_vm1, %v908_v29 }
 0x3d2   :  { %v916_v30 = vld [vmem:[#allocation4] sm:$0xff] }
 0x3d3   :  { %1232 = vlog2.f32 %v916_v30 }
 0x3e0   :  { %v1233_v31 = vpop.eup %1232 }
 0x3e1   :  { %v918_v32 = vmul.f32 0.6931472, %v1233_v31 }
 0x3e3   :  { %v919_v34 = vadd.f32 %v918_v32, %v915_v33 }
 0x3e5   :  { %923 = vperm.xlu1 %1113, %v919_v34  }
 0x460   :  { %v924_v35 = vpop.permute.xlu1 %923 }
 0x461   :  { %v926_v36 = vsub.f32 %v879_v13, %v924_v35 }
 0x463   :  { %927 = vst [vmem:[%s1442_s9] sm:$0xff] %v926_v36 }
 0x464   :  { %936 = vsyncpa [#allocation6], 1 }
 0x465   :  { %937 = vsyncpa [#allocation8], 1 }

</bundles_post_ra>
